<compile_context>
chip_gen: v7x
topology: tpu7x:2x2x1
jax: 0.10.0
libtpu: 0.0.40
codegen_flags: <defaults>
</compile_context>

<pallas_src>
from functools import partial

import jax
import jax.numpy as jnp
from jax import lax
from jax.experimental import pallas as pl
from jax.experimental.pallas import tpu as pltpu

_LANE = 128
_SUBLANE = 8
# ~1 MiB of f32 per stream per pipeline buffer: (2 in + 2 out) x 2 buffers
# = 8 MiB VMEM, comfortably inside v5e's 16 MiB default scoped limit while
# moving >= 4 MiB of HBM traffic per grid step.
_TARGET_BLOCK_ELEMS = 256 * 1024


def _phase_amp_gelu_kernel(re_ref, im_ref, ore_ref, oim_ref):
    re = re_ref[...]
    im = im_ref[...]
    # |z| (re*re+im*im may overflow to inf for |z| ~ 1.8e19; fine for activations)
    r = jnp.sqrt(re * re + im * im)
    # gelu(r)/r == 0.5*(1 + erf(r/sqrt(2))) exactly (erf GELU), and this form
    # gives the correct r -> 0 limit with no divide and no select.
    scale = 0.5 * (1.0 + lax.erf(r * jnp.float32(0.7071067811865476)))
    ore_ref[...] = re * scale
    oim_ref[...] = im * scale


@partial(jax.jit, static_argnames=("target_block_elems",))
def phase_amplitude_gelu(z, *, target_block_elems=_TARGET_BLOCK_ELEMS):
    """Apply gelu(|z|) * exp(i*angle(z)) elementwise to a complex array."""
    orig_shape = z.shape
    re = jnp.real(z).astype(jnp.float32).reshape(-1)
    im = jnp.imag(z).astype(jnp.float32).reshape(-1)
    n = re.size

    # Pick the widest lane-dense last dim (multiple of 128) dividing n so that
    # no padded copy is materialized; fall back to 128 lanes + pad otherwise.
    lane_w = None
    for cand in (1024, 512, 256, _LANE):
        if n % cand == 0:
            lane_w = cand
            break
    if lane_w is None:
        lane_w = _LANE
        pad = (-n) % lane_w
        re = jnp.pad(re, (0, pad))
        im = jnp.pad(im, (0, pad))
    rows = re.size // lane_w
    re2 = re.reshape(rows, lane_w)
    im2 = im.reshape(rows, lane_w)

    block_rows = max(_SUBLANE, (target_block_elems // lane_w) // _SUBLANE * _SUBLANE)
    if rows <= block_rows:
        br = rows           # single full-extent block (no divisibility constraint)
    else:
        br = block_rows     # multiple of 8; ragged last block handled by Pallas
    grid = (pl.cdiv(rows, br),)

    spec = pl.BlockSpec((br, lane_w), lambda i: (i, 0))
    out_re, out_im = pl.pallas_call(
        _phase_amp_gelu_kernel,
        out_shape=(
            jax.ShapeDtypeStruct((rows, lane_w), jnp.float32),
            jax.ShapeDtypeStruct((rows, lane_w), jnp.float32),
        ),
        grid_spec=pltpu.PrefetchScalarGridSpec(
            num_scalar_prefetch=0,
            grid=grid,
            in_specs=[spec, spec],
            out_specs=[spec, spec],
        ),
        compiler_params=pltpu.CompilerParams(
            # parallel axis shards the grid across v7x's two TensorCores
            dimension_semantics=("parallel",),
            vmem_limit_bytes=32 * 1024 * 1024,
        ),
        # Elementwise with identity block maps -> safe to write outputs over the
        # (intermediate) input slabs; avoids two extra full-size HBM buffers.
        input_output_aliases={0: 0, 1: 1},
    )(re2, im2)

    out_re = out_re.reshape(-1)[:n].reshape(orig_shape)
    out_im = out_im.reshape(-1)[:n].reshape(orig_shape)
    return lax.complex(out_re, out_im)


def _reference(z):
    r = jnp.abs(z)
    g = jax.nn.gelu(r, approximate=False)
    return (g * jnp.exp(1j * jnp.angle(z))).astype(jnp.complex64)


if __name__ == "__main__":
    key = jax.random.PRNGKey(0)
    k_re, k_im = jax.random.split(key)
    B, C, H, W = 2, 4, 16, 16
    re = jax.random.normal(k_re, (B, C, H, W), dtype=jnp.float32)
    im = jax.random.normal(k_im, (B, C, H, W), dtype=jnp.float32)
    # include an exact-zero element to exercise the r == 0 limit
    re = re.at[0, 0, 0, 0].set(0.0)
    im = im.at[0, 0, 0, 0].set(0.0)
    z = lax.complex(re, im)

    out = phase_amplitude_gelu(z)
    out = jax.block_until_ready(out)

    ref = _reference(z)
    assert out.shape == z.shape and out.dtype == jnp.complex64
    assert jnp.max(jnp.abs(out - ref)) < 1e-5

    print("KERNEL_OK")
</pallas_src>

<mosaic_0001>
module attributes {stable_mosaic.version = 11 : i64} {
  func.func @_phase_amp_gelu_kernel(%arg0: i32, %arg1: memref<2x1024xf32, #tpu.memory_space<vmem>>, %arg2: memref<2x1024xf32, #tpu.memory_space<vmem>>, %arg3: memref<2x1024xf32, #tpu.memory_space<vmem>>, %arg4: memref<2x1024xf32, #tpu.memory_space<vmem>>) attributes {dimension_semantics = [#tpu.dimension_semantics<parallel>], iteration_bounds = array<i64: 1>, scalar_prefetch = 0 : i64, scratch_operands = 0 : i64, tpu.core_type = #tpu.core_type<tc>, window_params = [{transform_indices = @transform_0, window_bounds = array<i64: 2, 1024>}, {transform_indices = @transform_1, window_bounds = array<i64: 2, 1024>}, {transform_indices = @transform_2, window_bounds = array<i64: 2, 1024>}, {transform_indices = @transform_3, window_bounds = array<i64: 2, 1024>}]} {
    %c0 = arith.constant 0 : index
    %c0_0 = arith.constant 0 : index
    %0 = vector.load %arg1[%c0, %c0_0] : memref<2x1024xf32, #tpu.memory_space<vmem>>, vector<2x1024xf32>
    %c0_1 = arith.constant 0 : index
    %c0_2 = arith.constant 0 : index
    %1 = vector.load %arg2[%c0_1, %c0_2] : memref<2x1024xf32, #tpu.memory_space<vmem>>, vector<2x1024xf32>
    %2 = arith.mulf %0, %0 : vector<2x1024xf32>
    %3 = arith.mulf %1, %1 : vector<2x1024xf32>
    %4 = arith.addf %2, %3 : vector<2x1024xf32>
    %5 = math.sqrt %4 : vector<2x1024xf32>
    %cst = arith.constant 0.707106769 : f32
    %6 = vector.broadcast %cst : f32 to vector<2x1024xf32>
    %7 = arith.mulf %5, %6 : vector<2x1024xf32>
    %8 = math.erf %7 : vector<2x1024xf32>
    %cst_3 = arith.constant 1.000000e+00 : f32
    %9 = vector.broadcast %cst_3 : f32 to vector<2x1024xf32>
    %10 = arith.addf %9, %8 : vector<2x1024xf32>
    %cst_4 = arith.constant 5.000000e-01 : f32
    %11 = vector.broadcast %cst_4 : f32 to vector<2x1024xf32>
    %12 = arith.mulf %11, %10 : vector<2x1024xf32>
    %13 = arith.mulf %0, %12 : vector<2x1024xf32>
    %c0_5 = arith.constant 0 : index
    %c0_6 = arith.constant 0 : index
    %14 = vector.load %arg3[%c0_5, %c0_6] : memref<2x1024xf32, #tpu.memory_space<vmem>>, vector<2x1024xf32>
    tpu.vector_store %arg3[%c0_5, %c0_6], %13 {strides = array<i32>} : memref<2x1024xf32, #tpu.memory_space<vmem>>, vector<2x1024xf32>,
    %15 = arith.mulf %1, %12 : vector<2x1024xf32>
    %c0_7 = arith.constant 0 : index
    %c0_8 = arith.constant 0 : index
    %16 = vector.load %arg4[%c0_7, %c0_8] : memref<2x1024xf32, #tpu.memory_space<vmem>>, vector<2x1024xf32>
    tpu.vector_store %arg4[%c0_7, %c0_8], %15 {strides = array<i32>} : memref<2x1024xf32, #tpu.memory_space<vmem>>, vector<2x1024xf32>,
    return
  }
  func.func @transform_0(%arg0: i32) -> (i32, i32) {
    %c0_i32 = arith.constant 0 : i32
    %c0_i32_0 = arith.constant 0 : i32
    return %arg0, %c0_i32 : i32, i32
  }
  func.func @transform_1(%arg0: i32) -> (i32, i32) {
    %c0_i32 = arith.constant 0 : i32
    %c0_i32_0 = arith.constant 0 : i32
    return %arg0, %c0_i32 : i32, i32
  }
  func.func @transform_2(%arg0: i32) -> (i32, i32) {
    %c0_i32 = arith.constant 0 : i32
    %c0_i32_0 = arith.constant 0 : i32
    return %arg0, %c0_i32 : i32, i32
  }
  func.func @transform_3(%arg0: i32) -> (i32, i32) {
    %c0_i32 = arith.constant 0 : i32
    %c0_i32_0 = arith.constant 0 : i32
    return %arg0, %c0_i32 : i32, i32
  }
}

</mosaic_0001>

<bundles_post_ra>
// kernel: custom-call.1
= control target key start
LH: loop header
LB: loop body
LE: loop exit
PB: predicated region body
PF: predicated region fallthrough
CT: control target
= control target key end

     0   :  { %s59_s0 = inlined_call_operand.hbm [shape: c64[2,4,16,16], index: 0, kind: input, shape index: {}]   ;;  %s60_s1 = inlined_call_operand.vmem [shape: f32[2,4,16,16], index: 1, kind: output, shape index: {}]  }
   0x1   :  { %s2_s8 = scalar_lea.hbm %s59_s0, 2048 }
   0x2   :  { %3 = vsyncpa [#allocation0], 0  ;;  %s4_s11 = sshll.u32 %s60_s1, 4  ;;  %s34_s14 = scalar_lea.hbm %s59_s0, 4096  ;;  %s5_s11 = int_to_ptr.vmem [resolvable:$true] %s4_s11 }
   0x3   :  { %p11_p0 = scmp.ne.s32.totalorder %s2_s8, %s34_s14  ;;  %p13_p1 = scmp.lt.u32.totalorder %s2_s8, %s59_s0 }
   0x4   :  { %p14_p2 = scmp.lt.u32.totalorder %s34_s14, %s34_s14  ;;  %p16_p4 = scmp.lt.u32.totalorder %s34_s14, %s2_s8 }
   0x6   :  { %p15_p3 = por %p14_p2, %p13_p1 }
   0x8   :  { %p17_p5 = por %p16_p4, %p15_p3 }
   0xa   :  { %p18_p6 = pnand %p17_p5, %p11_p0 }
   0xc   :  { %21 = shalt.err (!%p18_p6)  }
   0xd   :  { %s22_s17 = scalar_lea.vmem %s5_s11, 2048  ;;  %p27_p8 = scmp.lt.s32.totalorder %s5_s11, %s5_s11 }
   0xe   :  { %p23_p7 = scmp.ne.s32.totalorder %s5_s11, %s22_s17  ;;  %p28_p9 = scmp.lt.s32.totalorder %s22_s17, %s22_s17 }
  0x10   :  { %p29_p10 = por %p28_p9, %p27_p8 }
  0x12   :  { %p30_p11 = pnand %p29_p10, %p23_p7 }
  0x14   :  { %33 = shalt.err (!%p30_p11)  }
  0x15   :  { %7 = dma.hbm_to_vmem [thread:$0]  %s2_s8, 2048, %s5_s11, [#allocation0] }
  0x16   :  { %35 = dma.done.wait [#allocation0], 2048  }
  0x17   :  { %36 = vsyncadd [#allocation0], 4294965248 }
  0x18   :  { %9 = vsyncpa [#allocation0], 1 }

// kernel: custom-call
= control target key start
LH: loop header
LB: loop body
LE: loop exit
PB: predicated region body
PF: predicated region fallthrough
CT: control target
= control target key end

     0   :  { %2 = vsyncpa [#allocation0], 0  ;;  %s61_s0 = inlined_call_operand.hbm [shape: c64[2,4,16,16], index: 0, kind: input, shape index: {}]   ;;  %s62_s1 = inlined_call_operand.vmem [shape: f32[2,4,16,16], index: 1, kind: output, shape index: {}]  }
   0x1   :  { %s3_s8 = sshll.u32 %s62_s1, 4  ;;  %s9_s11 = scalar_lea.hbm %s61_s0, 2048  ;;  %s4_s8 = int_to_ptr.vmem [resolvable:$true] %s3_s8 }
   0x2   :  { %p10_p0 = scmp.ne.s32.totalorder %s61_s0, %s9_s11  ;;  %s11_s16 = scalar_lea.hbm %s61_s0, 4096 }
   0x3   :  { %p12_p1 = scmp.lt.u32.totalorder %s11_s16, %s9_s11  ;;  %p13_p2 = scmp.lt.u32.totalorder %s9_s11, %s61_s0 }
   0x5   :  { %p14_p3 = por %p13_p2, %p12_p1 }
   0x7   :  { %p15_p4 = pnand %p14_p3, %p10_p0 }
   0x9   :  { %18 = shalt.err (!%p15_p4)  }
   0xa   :  { %s19_s1 = scalar_lea.vmem %s4_s8, 2048  ;;  %p24_p6 = scmp.lt.s32.totalorder %s4_s8, %s4_s8 }
   0xb   :  { %p20_p5 = scmp.ne.s32.totalorder %s4_s8, %s19_s1  ;;  %p25_p7 = scmp.lt.s32.totalorder %s19_s1, %s19_s1 }
   0xd   :  { %p26_p8 = por %p25_p7, %p24_p6 }
   0xf   :  { %p27_p9 = pnand %p26_p8, %p20_p5 }
  0x11   :  { %30 = shalt.err (!%p27_p9)  }
  0x12   :  { %6 = dma.hbm_to_vmem [thread:$0]  %s61_s0, 2048, %s4_s8, [#allocation0] }
  0x13   :  { %31 = dma.done.wait [#allocation0], 2048  }
  0x14   :  { %32 = vsyncadd [#allocation0], 4294965248 }
  0x15   :  { %8 = vsyncpa [#allocation0], 1 }

// kernel: custom-call.2
= control target key start
LH: loop header
LB: loop body
LE: loop exit
PB: predicated region body
PF: predicated region fallthrough
CT: control target
= control target key end

     0   :  { %s126_s0 = inlined_call_operand.vmem [shape: f32[2,4,16,16], index: 0, kind: input, shape index: {}]   ;;  %s127_s1 = inlined_call_operand.vmem [shape: f32[2,4,16,16], index: 1, kind: input, shape index: {}]   ;;  %s128_s2 = inlined_call_operand.hbm [shape: c64[2,4,16,16], index: 2, kind: output, shape index: {}]  }
   0x1   :  { %s87_s11 = scalar_lea.hbm %s128_s2, 2048 }
   0x2   :  { %4 = vsyncpa [#allocation0], 0  ;;  %s5_s14 = sshll.u32 %s126_s0, 4  ;;  %s6_s14 = int_to_ptr.vmem [resolvable:$true] %s5_s14 }
   0x3   :  { %s18_s15 = scalar_lea.vmem %s6_s14, 2048  ;;  %p23_p1 = scmp.lt.s32.totalorder %s6_s14, %s6_s14 }
   0x4   :  { %p19_p0 = scmp.ne.s32.totalorder %s6_s14, %s18_s15  ;;  %p24_p2 = scmp.lt.s32.totalorder %s18_s15, %s18_s15 }
   0x6   :  { %p25_p3 = por %p24_p2, %p23_p1 }
   0x8   :  { %p26_p4 = pnand %p25_p3, %p19_p0 }
   0xa   :  { %29 = shalt.err (!%p26_p4)  }
   0xb   :  { %p31_p5 = scmp.ne.s32.totalorder %s128_s2, %s87_s11  ;;  %s32_s0 = scalar_lea.hbm %s128_s2, 4096 }
   0xc   :  { %p33_p6 = scmp.lt.u32.totalorder %s32_s0, %s87_s11  ;;  %p34_p7 = scmp.lt.u32.totalorder %s87_s11, %s128_s2 }
   0xe   :  { %p35_p8 = por %p34_p7, %p33_p6 }
  0x10   :  { %p36_p9 = pnand %p35_p8, %p31_p5 }
  0x12   :  { %39 = shalt.err (!%p36_p9)  }
  0x13   :  { %8 = dma.vmem_to_hbm [thread:$0]  %s6_s14, 2048, %s128_s2, [#allocation0] }
  0x14   :  { %65 = dma.done.wait [#allocation0], 2048  }
  0x15   :  { %66 = vsyncadd [#allocation0], 4294965248 }
  0x16   :  { %10 = vsyncpa [#allocation0], 1 }
  0x17   :  { %11 = vsyncpa [#allocation1], 0  ;;  %s12_s28 = sshll.u32 %s127_s1, 4  ;;  %s13_s28 = int_to_ptr.vmem [resolvable:$true] %s12_s28 }
  0x18   :  { %s40_s29 = scalar_lea.vmem %s13_s28, 2048  ;;  %p45_p11 = scmp.lt.s32.totalorder %s13_s28, %s13_s28 }
  0x19   :  { %p41_p10 = scmp.ne.s32.totalorder %s13_s28, %s40_s29  ;;  %p46_p12 = scmp.lt.s32.totalorder %s40_s29, %s40_s29 }
  0x1b   :  { %p47_p13 = por %p46_p12, %p45_p11 }
  0x1d   :  { %p48_p0 = pnand %p47_p13, %p41_p10 }
  0x1f   :  { %51 = shalt.err (!%p48_p0)  }
  0x20   :  { %p53_p1 = scmp.ne.s32.totalorder %s87_s11, %s32_s0  ;;  %p56_p2 = scmp.lt.u32.totalorder %s32_s0, %s32_s0 }
  0x22   :  { %p57_p3 = por %p56_p2, %p34_p7 }
  0x24   :  { %p59_p4 = por %p57_p3, %p33_p6 }
  0x26   :  { %p60_p5 = pnand %p59_p4, %p53_p1 }
  0x28   :  { %63 = shalt.err (!%p60_p5)  }
  0x29   :  { %15 = dma.vmem_to_hbm [thread:$0]  %s13_s28, 2048, %s87_s11, [#allocation1] }
  0x2a   :  { %67 = dma.done.wait [#allocation1], 2048  }
  0x2b   :  { %68 = vsyncadd [#allocation1], 4294965248 }
  0x2c   :  { %17 = vsyncpa [#allocation1], 1 }

// kernel: phase_amplitude_gelu.1
= control target key start
LH: loop header
LB: loop body
LE: loop exit
PB: predicated region body
PF: predicated region fallthrough
CT: control target
= control target key end

     0   :  { %s113_s0 = inlined_call_operand.vmem [shape: f32[2,1024], index: 0, kind: input, shape index: {}, may-alias: {0,2}]   ;;  %s114_s1 = inlined_call_operand.vmem [shape: f32[2,1024], index: 1, kind: input, shape index: {}, may-alias: {1,3}]   ;;  %s115_s2 = inlined_call_operand.vmem [shape: f32[2,1024], index: 2, kind: output, shape index: {0}, may-alias: {0,2}]   ;;  %s116_s3 = inlined_call_operand.vmem [shape: f32[2,1024], index: 3, kind: output, shape index: {1}, may-alias: {1,3}]  }
   0x1   :  { %v13_v0 = vld [vmem:[%s113_s0] sm:$0xff]  ;;  %v14_v2 = vld [vmem:[%s113_s0 + $0x8] sm:$0xff] }
   0x2   :  { %v15_v1 = vld [vmem:[%s114_s1] sm:$0xff]  ;;  %v17_v3 = vmul.f32 %v13_v0, %v13_v0  ;;  %v16_v5 = vld [vmem:[%s114_s1 + $0x8] sm:$0xff]  ;;  %v18_v6 = vmul.f32 %v14_v2, %v14_v2 }
   0x3   :  { %v19_v4 = vmul.f32 %v15_v1, %v15_v1  ;;  %v20_v7 = vmul.f32 %v16_v5, %v16_v5 }
   0x5   :  { %v21_v8 = vadd.f32 %v19_v4, %v17_v3  ;;  %v22_v9 = vadd.f32 %v20_v7, %v18_v6 }
   0x7   :  { %61 = vrsqrt.f32 %v21_v8  ;;  %vm25_vm0 = vcmp.eq.f32.partialorder %v21_v8, inf  ;;  %v28_v11 = vand.u32 2147483648, %v21_v8  ;;  %vm27_vm1 = vcmp.eq.f32.partialorder %v21_v8, 0.0 }
   0x8   :  { %63 = vrsqrt.f32 %v22_v9  ;;  %vm32_vm2 = vcmp.eq.f32.partialorder %v22_v9, inf  ;;  %v35_v14 = vand.u32 2147483648, %v22_v9  ;;  %vm34_vm3 = vcmp.eq.f32.partialorder %v22_v9, 0.0 }
  0x11   :  { %v62_v10 = vpop.eup %61 }
  0x12   :  { %v64_v12 = vpop.eup %63  ;;  %v24_v13 = vmul.f32 %v62_v10, %v21_v8 }
  0x13   :  { %v31_v15 = vmul.f32 %v64_v12, %v22_v9 }
  0x14   :  { %v26_v16 = vsel %vm25_vm0, %v21_v8, %v24_v13 }
  0x15   :  { %v29_v17 = vsel %vm27_vm1, %v28_v11, %v26_v16  ;;  %v33_v18 = vsel %vm32_vm2, %v22_v9, %v31_v15 }
  0x16   :  { %v37_v19 = vmul.f32 0.70710677, %v29_v17  ;;  %v36_v20 = vsel %vm34_vm3, %v35_v14, %v33_v18 }
  0x17   :  { %v38_v21 = vmul.f32 0.70710677, %v36_v20 }
  0x18   :  { %65 = verf.f32 %v37_v19 }
  0x19   :  { %67 = verf.f32 %v38_v21 }
  0x22   :  { %v66_v22 = vpop.eup %65 }
  0x23   :  { %v68_v23 = vpop.eup %67  ;;  %v41_v24 = vadd.f32 1.0, %v66_v22 }
  0x24   :  { %v42_v25 = vadd.f32 1.0, %v68_v23 }
  0x25   :  { %v43_v26 = vmul.f32 0.5, %v41_v24 }
  0x26   :  { %v44_v27 = vmul.f32 0.5, %v42_v25 }
  0x27   :  { %v45_v28 = vmul.f32 %v43_v26, %v13_v0  ;;  %v49_v29 = vmul.f32 %v43_v26, %v15_v1 }
  0x28   :  { %v46_v30 = vmul.f32 %v44_v27, %v14_v2  ;;  %v50_v31 = vmul.f32 %v44_v27, %v16_v5 }
  0x29   :  { %47 = vst [vmem:[%s115_s2] sm:$0xff] %v45_v28  ;;  %51 = vst [vmem:[%s116_s3] sm:$0xff] %v49_v29 }
  0x2a   :  { %48 = vst [vmem:[%s115_s2 + $0x8] sm:$0xff] %v46_v30  ;;  %52 = vst [vmem:[%s116_s3 + $0x8] sm:$0xff] %v50_v31 }

</bundles_post_ra>
